<compile_context>
chip_gen: v7x
topology: tpu7x:2x2x1
jax: 0.10.0
libtpu: 0.0.40
codegen_flags: <defaults>
</compile_context>

<pallas_src>
import jax
import jax.numpy as jnp
from jax.experimental import pallas as pl
from jax.experimental.pallas import tpu as pltpu

_LANE = 128          # lanes per vreg row
_SUB = 8             # f32 sublanes per vreg
_TILE_ROWS = 8192    # target rows per grid step: 8192*128*4 B = 4 MiB / buffer


def _fused_affine_kernel(wf_ref, bf_ref, x_ref, o_ref):
    """Fused (Linear -> Linear) on an interleaved, lane-dense tile.

    x_ref / o_ref: (rt, 128) VMEM; lanes hold [f0, f1, f0, f1, ...] (the
                   row-major view of the (B, 2) tensor).
    wf_ref:        (2, 2) SMEM, out = x @ Wf + bf  (Wf[in, out]).
    bf_ref:        (2,)   SMEM.
    """
    x = x_ref[...]
    lanes = x.shape[-1]
    lane_id = jax.lax.broadcasted_iota(jnp.int32, x.shape, x.ndim - 1)
    even = (lane_id & 1) == 0          # True on feature-0 lanes

    # De-interleave: bring the partner feature onto every lane.  XLU rotates;
    # wrap-around lanes are never selected by the parity mask.
    f0 = jnp.where(even, x, pltpu.roll(x, 1, 1))           # x[l-1] on odd lanes
    f1 = jnp.where(even, pltpu.roll(x, lanes - 1, 1), x)   # x[l+1] on even lanes

    # Per-lane-parity scalar coefficients (SMEM scalar reads, VPU selects).
    w_a = jnp.where(even, wf_ref[0, 0], wf_ref[0, 1])
    w_b = jnp.where(even, wf_ref[1, 0], wf_ref[1, 1])
    bias = jnp.where(even, bf_ref[0], bf_ref[1])

    # Single full-tile, unmasked, lane-dense store in the interleaved layout.
    o_ref[...] = f0 * w_a + f1 * w_b + bias


@jax.jit
def mlp_clf_forward(x, w1, b1, w2, b2):
    """Forward pass of MLP_clf: linear2(linear1(x.view(B, -1)))."""
    B = x.shape[0]
    x2d = x.reshape(B, -1).astype(jnp.float32)      # PyTorch X.view(B, -1)
    F = x2d.shape[1]
    assert F == 2, "MLP_clf expects 2 input features"

    # Fuse the two bias-only linears (valid because there is no nonlinearity):
    #   (x @ W1.T + b1) @ W2.T + b2 = x @ (W1.T @ W2.T) + (b1 @ W2.T + b2)
    wf = (w1.T @ w2.T).astype(jnp.float32)                                   # (2, 2)
    bf = (b1.reshape(1, -1) @ w2.T + b2.reshape(1, -1)).reshape(-1)
    bf = bf.astype(jnp.float32)                                              # (2,)

    # Free row-major flat view; pad only to the 128-lane boundary (no copy at
    # all when B % 64 == 0).
    n = B * F
    n_pad = (-n) % _LANE
    xf = x2d.reshape(-1)
    if n_pad:
        xf = jnp.pad(xf, (0, n_pad))
    rows = (n + n_pad) // _LANE
    xr = xf.reshape(rows, _LANE)                    # sublane- and lane-dense

    # Tile rows: multiple of 8 (sublane-dense), capped so double-buffered
    # in+out stays well under v7x's VMEM budget, and small enough that large
    # batches give >= 4 grid steps (keeps both v7x TensorCores busy).
    if rows <= _SUB:
        rt = rows                                   # single full-array block
    else:
        rt = min(_TILE_ROWS, max(_SUB, (pl.cdiv(rows, 4) // _SUB) * _SUB))
    num_tiles = pl.cdiv(rows, rt)                   # masked last tile, no pad-to-tile

    out = pl.pallas_call(
        _fused_affine_kernel,
        out_shape=jax.ShapeDtypeStruct((rows, _LANE), jnp.float32),
        grid=(num_tiles,),
        in_specs=[
            pl.BlockSpec(memory_space=pltpu.MemorySpace.SMEM),   # wf (2, 2)
            pl.BlockSpec(memory_space=pltpu.MemorySpace.SMEM),   # bf (2,)
            pl.BlockSpec((rt, _LANE), lambda i: (i, 0)),         # x tile
        ],
        out_specs=pl.BlockSpec((rt, _LANE), lambda i: (i, 0)),
        compiler_params=pltpu.CompilerParams(
            dimension_semantics=("parallel",),
        ),
        cost_estimate=pl.CostEstimate(
            flops=4 * rows * _LANE,                 # 2 mul + 2 add per element
            transcendentals=0,
            bytes_accessed=2 * rows * _LANE * 4,    # streaming read + write
        ),
    )(wf, bf, xr)

    # Interleaved output -> (B, 2) is a free view (slice only if we padded).
    of = out.reshape(-1)
    if n_pad:
        of = of[:n]
    return of.reshape(B, F)


if __name__ == "__main__":
    key = jax.random.PRNGKey(0)
    kx, k1, k2, k3, k4 = jax.random.split(key, 5)

    # PyTorch-shaped parameters: Linear(2, 2) weight (out, in) + bias (out,)
    w1 = jax.random.uniform(k1, (2, 2), jnp.float32, -0.5, 0.5)
    b1 = jax.random.uniform(k2, (2,), jnp.float32, -0.5, 0.5)
    w2 = jax.random.uniform(k3, (2, 2), jnp.float32, -0.5, 0.5)
    b2 = jax.random.uniform(k4, (2,), jnp.float32, -0.5, 0.5)

    def ref_forward(x):
        return (x.reshape(x.shape[0], -1) @ w1.T + b1) @ w2.T + b2

    # Small primary case, plus shapes exercising the lane-pad path and a
    # multi-step grid with a masked (partial) last tile.
    for bs in (8, 100, 700):
        x = jax.random.normal(jax.random.fold_in(kx, bs), (bs, 2), jnp.float32)
        out = jax.block_until_ready(mlp_clf_forward(x, w1, b1, w2, b2))
        assert out.shape == (bs, 2)
        assert jnp.allclose(out, ref_forward(x), atol=1e-5, rtol=1e-5), (
            f"mismatch vs reference at batch={bs}")

    print("KERNEL_OK")
</pallas_src>

<mosaic_0001>
module attributes {stable_mosaic.version = 11 : i64} {
  func.func @_fused_affine_kernel(%arg0: i32, %arg1: memref<2x2xf32, #tpu.memory_space<smem>>, %arg2: memref<2xf32, #tpu.memory_space<smem>>, %arg3: memref<1x128xf32, #tpu.memory_space<vmem>>, %arg4: memref<1x128xf32, #tpu.memory_space<vmem>>) attributes {dimension_semantics = [#tpu.dimension_semantics<parallel>], iteration_bounds = array<i64: 1>, scalar_prefetch = 0 : i64, scratch_operands = 0 : i64, tpu.core_type = #tpu.core_type<tc>, window_params = [{transform_indices = @transform_0, window_bounds = array<i64: 2, 2>}, {transform_indices = @transform_1, window_bounds = array<i64: 2>}, {transform_indices = @transform_2, window_bounds = array<i64: 1, 128>}, {transform_indices = @transform_3, window_bounds = array<i64: 1, 128>}]} {
    %c0 = arith.constant 0 : index
    %c0_0 = arith.constant 0 : index
    %0 = vector.load %arg3[%c0, %c0_0] : memref<1x128xf32, #tpu.memory_space<vmem>>, vector<1x128xf32>
    %1 = tpu.iota {dimensions = array<i32: 1>} : vector<1x128xi32>
    %c1_i32 = arith.constant 1 : i32
    %2 = vector.broadcast %c1_i32 : i32 to vector<1x128xi32>
    %3 = arith.andi %1, %2 : vector<1x128xi32>
    %c0_i32 = arith.constant 0 : i32
    %4 = vector.broadcast %c0_i32 : i32 to vector<1x128xi32>
    %5 = arith.cmpi eq, %3, %4 : vector<1x128xi32>
    %c1_i32_1 = arith.constant 1 : i32
    %6 = tpu.dynamic_rotate %0 by %c1_i32_1 dim 1 : vector<1x128xf32>, i32 -> vector<1x128xf32>
    %7 = arith.select %5, %0, %6 : vector<1x128xi1>, vector<1x128xf32>
    %c127_i32 = arith.constant 127 : i32
    %8 = tpu.dynamic_rotate %0 by %c127_i32 dim 1 : vector<1x128xf32>, i32 -> vector<1x128xf32>
    %9 = arith.select %5, %8, %0 : vector<1x128xi1>, vector<1x128xf32>
    %c0_2 = arith.constant 0 : index
    %c0_3 = arith.constant 0 : index
    %10 = memref.load %arg1[%c0_2, %c0_3] : memref<2x2xf32, #tpu.memory_space<smem>>
    %c0_4 = arith.constant 0 : index
    %c1 = arith.constant 1 : index
    %11 = memref.load %arg1[%c0_4, %c1] : memref<2x2xf32, #tpu.memory_space<smem>>
    %12 = vector.broadcast %10 : f32 to vector<1x128xf32>
    %13 = vector.broadcast %11 : f32 to vector<1x128xf32>
    %14 = arith.select %5, %12, %13 : vector<1x128xi1>, vector<1x128xf32>
    %c1_5 = arith.constant 1 : index
    %c0_6 = arith.constant 0 : index
    %15 = memref.load %arg1[%c1_5, %c0_6] : memref<2x2xf32, #tpu.memory_space<smem>>
    %c1_7 = arith.constant 1 : index
    %c1_8 = arith.constant 1 : index
    %16 = memref.load %arg1[%c1_7, %c1_8] : memref<2x2xf32, #tpu.memory_space<smem>>
    %17 = vector.broadcast %15 : f32 to vector<1x128xf32>
    %18 = vector.broadcast %16 : f32 to vector<1x128xf32>
    %19 = arith.select %5, %17, %18 : vector<1x128xi1>, vector<1x128xf32>
    %c0_9 = arith.constant 0 : index
    %20 = memref.load %arg2[%c0_9] : memref<2xf32, #tpu.memory_space<smem>>
    %c1_10 = arith.constant 1 : index
    %21 = memref.load %arg2[%c1_10] : memref<2xf32, #tpu.memory_space<smem>>
    %22 = vector.broadcast %20 : f32 to vector<1x128xf32>
    %23 = vector.broadcast %21 : f32 to vector<1x128xf32>
    %24 = arith.select %5, %22, %23 : vector<1x128xi1>, vector<1x128xf32>
    %25 = arith.mulf %7, %14 : vector<1x128xf32>
    %26 = arith.mulf %9, %19 : vector<1x128xf32>
    %27 = arith.addf %25, %26 : vector<1x128xf32>
    %28 = arith.addf %27, %24 : vector<1x128xf32>
    %c0_11 = arith.constant 0 : index
    %c0_12 = arith.constant 0 : index
    %29 = vector.load %arg4[%c0_11, %c0_12] : memref<1x128xf32, #tpu.memory_space<vmem>>, vector<1x128xf32>
    tpu.vector_store %arg4[%c0_11, %c0_12], %28 {strides = array<i32>} : memref<1x128xf32, #tpu.memory_space<vmem>>, vector<1x128xf32>,
    return
  }
  func.func @transform_0(%arg0: i32) -> (i32, i32) {
    %c0_i32 = arith.constant 0 : i32
    %c0_i32_0 = arith.constant 0 : i32
    %c0_i32_1 = arith.constant 0 : i32
    return %c0_i32, %c0_i32_0 : i32, i32
  }
  func.func @transform_1(%arg0: i32) -> i32 {
    %c0_i32 = arith.constant 0 : i32
    %c0_i32_0 = arith.constant 0 : i32
    return %c0_i32 : i32
  }
  func.func @transform_2(%arg0: i32) -> (i32, i32) {
    %c0_i32 = arith.constant 0 : i32
    %c0_i32_0 = arith.constant 0 : i32
    return %arg0, %c0_i32 : i32, i32
  }
  func.func @transform_3(%arg0: i32) -> (i32, i32) {
    %c0_i32 = arith.constant 0 : i32
    %c0_i32_0 = arith.constant 0 : i32
    return %arg0, %c0_i32 : i32, i32
  }
}

</mosaic_0001>

<bundles_post_ra>
// kernel: mlp_clf_forward.1
= control target key start
LH: loop header
LB: loop body
LE: loop exit
PB: predicated region body
PF: predicated region fallthrough
CT: control target
= control target key end

     0   :  { %8 = vsyncpa [#allocation3], 0  ;;  %s148_s0 = inlined_call_operand.vmem [shape: f32[2,2], index: 0, kind: input, shape index: {}]   ;;  %s149_s1 = inlined_call_operand.vmem [shape: f32[2], index: 1, kind: input, shape index: {}]   ;;  %s150_s2 = inlined_call_operand.vmem [shape: f32[1,128], index: 2, kind: input, shape index: {}]   ;;  %s151_s3 = inlined_call_operand.vmem [shape: f32[1,128], index: 3, kind: output, shape index: {}]  }
   0x1   :  { %s16_s14 = sshll.u32 %s148_s0, 4  ;;  %s17_s14 = int_to_ptr.vmem [resolvable:$true] %s16_s14 }
   0x2   :  { %9 = vsyncpa [#allocation5], 0  ;;  %s26_s17 = sshll.u32 %s149_s1, 4  ;;  %s84_s18 = scalar_lea.vmem %s17_s14, 32  ;;  %s27_s17 = int_to_ptr.vmem [resolvable:$true] %s26_s17 }
   0x3   :  { %p85_p0 = scmp.ne.s32.totalorder %s17_s14, %s84_s18  ;;  %p89_p1 = scmp.lt.s32.totalorder %s17_s14, %s17_s14 }
   0x4   :  { %p90_p2 = scmp.lt.s32.totalorder %s84_s18, %s84_s18 }
   0x6   :  { %p91_p3 = por %p90_p2, %p89_p1 }
   0x8   :  { %p92_p4 = pnand %p91_p3, %p85_p0 }
   0xa   :  { %95 = shalt.err (!%p92_p4)
}
   0xb   :  { %s112_s19 = smov [#allocation2]   ;;  %s96_s20 = scalar_lea.vmem %s27_s17, 16 }
   0xc   :  { %19 = dma.vmem_to_smem %s17_s14, 32, %s112_s19, [#allocation3]  }
   0xd   :  { %p97_p5 = scmp.ne.s32.totalorder %s27_s17, %s96_s20  ;;  %p101_p6 = scmp.lt.s32.totalorder %s27_s17, %s27_s17 }
   0xe   :  { %p102_p7 = scmp.lt.s32.totalorder %s96_s20, %s96_s20 }
  0x10   :  { %p103_p8 = por %p102_p7, %p101_p6 }
  0x12   :  { %p104_p9 = pnand %p103_p8, %p97_p5 }
  0x14   :  { %107 = shalt.err (!%p104_p9)
}
  0x15   :  { %s113_s0 = smov [#allocation4]  }
  0x16   :  { %29 = dma.vmem_to_smem %s27_s17, 16, %s113_s0, [#allocation5]  }
  0x17   :  { %108 = dma.done.wait [#allocation3], 32  }
  0x18   :  { %109 = vsyncadd [#allocation3], 4294967264 }
  0x19   :  { %110 = dma.done.wait [#allocation5], 16  }
  0x1a   :  { %111 = vsyncadd [#allocation5], 4294967280 }
  0x1b   :  { %38 = sfence }
  0x1c   :  { %v39_v0 = vld [vmem:[%s150_s2] sm:$0x1]  ;;  %s114_s22 = smov 1   ;;  %s115_s23 = smov 127   ;;  %v40_v1 = vlaneseq }
  0x1d   :  { %44 = vrot.lane.b32.xlu0 %v39_v0, %s114_s22  ;;  %s50_s24 = sld [smem:[#allocation2]]  ;;  %s76_s25 = sld [smem:[#allocation2 + $0x1]] }
  0x1e   :  { %v41_v2 = vand.u32 127, %v40_v1  ;;  %s77_s26 = sld [smem:[#allocation2 + $0x80]]  ;;  %s78_s27 = sld [smem:[#allocation2 + $0x81]] }
  0x1f   :  { %s60_s28 = sld [smem:[#allocation4]]  ;;  %s79_s29 = sld [smem:[#allocation4 + $0x1]] }
  0x20   :  { %v42_v3 = vand.u32 1, %v41_v2 }
  0x21   :  { %47 = vrot.lane.b32.xlu0 %v39_v0, %s115_s23 }
  0x22   :  { %vm43_vm0 = vcmp.eq.s32.totalorder %v42_v3, 0 }
  0x23   :  { %v52_v4 = vstv %s50_s24  ;;  %v53_v5 = vstv %s76_s25 }
  0x24   :  { %v57_v7 = vstv %s77_s26  ;;  %v58_v8 = vstv %s78_s27  ;;  %v54_v9 = vsel %vm43_vm0, %v52_v4, %v53_v5 }
  0x25   :  { %v59_v11 = vsel %vm43_vm0, %v57_v7, %v58_v8  ;;  %v62_v12 = vstv %s60_s28  ;;  %v63_v13 = vstv %s79_s29 }
  0x26   :  { %v64_v18 = vsel %vm43_vm0, %v62_v12, %v63_v13 }
  0x8f   :  { %v45_v6 = vpop.permute.xlu0 %44 }
  0x90   :  { %v46_v10 = vsel %vm43_vm0, %v39_v0, %v45_v6 }
  0x91   :  { %v65_v16 = vmul.f32 %v54_v9, %v46_v10 }
  0x93   :  { %v48_v14 = vpop.permute.xlu0 %47 }
  0x94   :  { %v49_v15 = vsel %vm43_vm0, %v48_v14, %v39_v0 }
  0x95   :  { %v66_v17 = vmul.f32 %v59_v11, %v49_v15 }
  0x97   :  { %v67_v19 = vadd.f32 %v66_v17, %v65_v16 }
  0x99   :  { %v68_v20 = vadd.f32 %v67_v19, %v64_v18 }
  0x9b   :  { %69 = vst [vmem:[%s151_s3] sm:$0x1] %v68_v20 }
  0x9c   :  { %74 = vsyncpa [#allocation3], 1 }
  0x9d   :  { %75 = vsyncpa [#allocation5], 1 }

</bundles_post_ra>
